<compile_context>
chip_gen: v6e
topology: v6e:2x2x1
jax: 0.10.0
libtpu: 0.0.40
codegen_flags: <defaults>
</compile_context>

<pallas_src>
import numpy as np
import jax
import jax.numpy as jnp
from jax import lax
from jax.experimental import pallas as pl
from jax.experimental.pallas import tpu as pltpu

# ----------------------------------------------------------------------------
# "Head" configuration (deterministic, in-script; stands in for the checkpoint's
# bbox_coder / test_cfg parameters referenced by pts_bbox_head.get_bboxes).
# ----------------------------------------------------------------------------
NUM_CLASSES = 3
H = 16
W = 16
HW = H * W
LOG2_W = W.bit_length() - 1
OUT_SIZE_FACTOR = 8.0
VOXEL_X = 0.1
VOXEL_Y = 0.1
PC_RANGE_X = -51.2
PC_RANGE_Y = -51.2
MAX_NUM = 50            # K boxes kept per sample (bbox_coder max_num)
SCORE_THRESHOLD = 0.10  # bbox_coder score_threshold

SCALE_X = OUT_SIZE_FACTOR * VOXEL_X     # constant-folded
SCALE_Y = OUT_SIZE_FACTOR * VOXEL_Y

assert (W & (W - 1)) == 0, "bit-trick center decode needs pow2 W"

# TODO(synk): rotated / circle NMS and post_center_range filtering from test_cfg
#             have no clean Pallas equivalent (data-dependent pairwise
#             suppression); they are omitted here.
# TODO(synk): top-K here is over the per-pixel max-class score; the reference
#             bbox_coder takes top-K over the full (num_classes * H * W) heatmap.
# TODO(synk): at production BEV sizes, add a lane-axis grid over HW marked
#             parallel/core_parallel (v7x: 2 TCs, only 64 MiB VMEM) with
#             double-buffered lane tiles; and if the head emits bf16, keep the
#             inputs bf16 in HBM and upcast inside the kernel.

# Input layouts (per array, batch-major rows, HW lanes):
#   heat (B*3, HW) | reg (B*2, HW) | hei (B*1, HW) | dim (B*3, HW)
#   rot  (B*2, HW) | vel (B*2, HW)
# Output layouts:
#   boxes (B*10, HW): x, y, z, w, l, h, sin, cos, vx, vy   (batch-major)
#   scores (B, HW) f32 | labels (B, HW) int32


def _decode_kernel(heat_ref, reg_ref, hei_ref, dim_ref, rot_ref, vel_ref,
                   boxes_ref, scores_ref, labels_ref):
    hw = heat_ref.shape[1]
    B = heat_ref.shape[0] // NUM_CLASSES

    # Load every input slab exactly once; slice the values in registers.
    heat = heat_ref[...]
    reg = reg_ref[...]
    hei = hei_ref[...]
    dim = dim_ref[...]
    rot = rot_ref[...]
    vel = vel_ref[...]

    # Pixel-coordinate decode is batch-invariant: compute / cast once (hoisted).
    idx = lax.broadcasted_iota(jnp.int32, (1, hw), 1)
    xs_i = (idx & (W - 1)).astype(jnp.float32)      # idx % W
    ys_i = (idx >> LOG2_W).astype(jnp.float32)      # idx // W

    score_rows, label_rows, box_rows = [], [], []
    for b in range(B):                               # static unroll, B is small
        hb = b * NUM_CLASSES
        # --- max / argmax on raw logits: unrolled compare/select chain --------
        # '>' keeps first-max-wins tie break (torch argmax semantics); sigmoid
        # is monotone so argmax over logits == argmax over probabilities.
        best = heat[hb:hb + 1, :]
        label = jnp.zeros((1, hw), jnp.int32)
        for c in range(1, NUM_CLASSES):
            lc = heat[hb + c:hb + c + 1, :]
            is_better = lc > best
            best = jnp.where(is_better, lc, best)
            label = jnp.where(is_better, jnp.int32(c), label)
        # sigmoid only on the winning (1, HW) row; divide goes to the EUP slot.
        score = pl.reciprocal(1.0 + jnp.exp(-best), approx=True)

        # --- center / size / height decode ------------------------------------
        xs = (xs_i + reg[2 * b:2 * b + 1, :]) * SCALE_X + PC_RANGE_X
        ys = (ys_i + reg[2 * b + 1:2 * b + 2, :]) * SCALE_Y + PC_RANGE_Y
        dims = jnp.exp(dim[3 * b:3 * b + 3, :])               # (3, HW): w, l, h
        z = hei[b:b + 1, :] - 0.5 * dims[2:3, :]              # gravity -> bottom

        score_rows.append(score)
        label_rows.append(label)
        box_rows.append(jnp.concatenate(
            [xs, ys, z, dims,
             rot[2 * b:2 * b + 2, :],                          # sin, cos
             vel[2 * b:2 * b + 2, :]], axis=0))                # vx, vy -> (10, HW)

    # Single grouped store per output (rows assembled in registers).
    boxes_ref[...] = jnp.concatenate(box_rows, axis=0)         # (B*10, HW)
    scores_ref[...] = jnp.concatenate(score_rows, axis=0)      # (B, HW)
    labels_ref[...] = jnp.concatenate(label_rows, axis=0)      # (B, HW) int32


def decode_dense(heat, reg, hei, dim, rot, vel):
    """Flattened head tensors (B*C, HW) f32 -> (boxes (B*10,HW), scores (B,HW), labels (B,HW) i32)."""
    B = heat.shape[0] // NUM_CLASSES
    hw = heat.shape[1]
    # Single gridless invocation: six input DMAs + three output DMAs, whole
    # problem (~26 KB for B=2) fits trivially in VMEM.
    return pl.pallas_call(
        _decode_kernel,
        out_shape=(jax.ShapeDtypeStruct((B * 10, hw), jnp.float32),
                   jax.ShapeDtypeStruct((B, hw), jnp.float32),
                   jax.ShapeDtypeStruct((B, hw), jnp.int32)),
        in_specs=[pl.BlockSpec(memory_space=pltpu.MemorySpace.VMEM)
                  for _ in range(6)],
        out_specs=tuple(pl.BlockSpec(memory_space=pltpu.MemorySpace.VMEM)
                        for _ in range(3)),
    )(heat, reg, hei, dim, rot, vel)


def head_post_process(outs):
    """Mirrors HeadPostProcessor.forward: get_bboxes -> (boxes, scores, labels)."""
    heat, reg, hei, dim, rot, vel = outs
    B = heat.shape[0]

    def flat(x):
        # (B, C, H, W) -> (B*C, HW): contiguous reshape, no transpose, no copy.
        return x.reshape(B * x.shape[1], HW).astype(jnp.float32)

    boxes_bm, scores, labels = decode_dense(
        flat(heat), flat(reg), flat(hei), flat(dim), flat(rot), flat(vel))
    boxes_d = boxes_bm.reshape(B, 10, HW)                      # pure reshape (view)

    # glue: top-K selection + gather + rot = atan2(sin, cos) on the K candidates
    topk_scores, topk_inds = jax.lax.top_k(scores, MAX_NUM)    # (B, K)
    labels_k = jnp.take_along_axis(labels, topk_inds, axis=1)
    boxes_k = jnp.take_along_axis(boxes_d, topk_inds[:, None, :], axis=2)  # (B, 10, K)
    rot_dec = jnp.arctan2(boxes_k[:, 6, :], boxes_k[:, 7, :])
    boxes9 = jnp.stack(
        [boxes_k[:, 0], boxes_k[:, 1], boxes_k[:, 2],
         boxes_k[:, 3], boxes_k[:, 4], boxes_k[:, 5],
         rot_dec, boxes_k[:, 8], boxes_k[:, 9]], axis=1)       # (B, 9, K)
    boxes9 = jnp.transpose(boxes9, (0, 2, 1))                  # (B, K, 9)
    return boxes9, topk_scores, labels_k


def bbox3d2result(bboxes, scores, labels):
    return dict(boxes_3d=bboxes, scores_3d=scores, labels_3d=labels)


if __name__ == "__main__":
    key = jax.random.PRNGKey(0)
    B = 2
    ks = jax.random.split(key, 6)
    heat = jax.random.normal(ks[0], (B, NUM_CLASSES, H, W), jnp.float32)
    reg = jax.random.normal(ks[1], (B, 2, H, W), jnp.float32) * 0.5
    hei = jax.random.normal(ks[2], (B, 1, H, W), jnp.float32)
    dim = jax.random.normal(ks[3], (B, 3, H, W), jnp.float32) * 0.3
    rot = jax.random.normal(ks[4], (B, 2, H, W), jnp.float32)
    vel = jax.random.normal(ks[5], (B, 2, H, W), jnp.float32)

    outs = (heat, reg, hei, dim, rot, vel)
    boxes, scores, labels = head_post_process(outs)
    jax.block_until_ready((boxes, scores, labels))

    # host-side packaging == forward's bbox_pts / bbox_list construction,
    # with the score-threshold filter applied per sample.
    boxes_np = np.asarray(boxes)
    scores_np = np.asarray(scores)
    labels_np = np.asarray(labels)
    img_metas = [dict() for _ in range(B)]
    bbox_list = [dict() for _ in range(len(img_metas))]
    for b, result_dict in enumerate(bbox_list):
        keep = scores_np[b] > SCORE_THRESHOLD
        result_dict['pts_bbox'] = bbox3d2result(
            boxes_np[b][keep], scores_np[b][keep], labels_np[b][keep])

    assert len(bbox_list) == B
    assert bbox_list[0]['pts_bbox']['boxes_3d'].shape[-1] == 9
    print("KERNEL_OK")
</pallas_src>

<mosaic_0001>
module attributes {stable_mosaic.version = 11 : i64} {
  func.func @_decode_kernel(%arg0: memref<6x256xf32, #tpu.memory_space<vmem>>, %arg1: memref<4x256xf32, #tpu.memory_space<vmem>>, %arg2: memref<2x256xf32, #tpu.memory_space<vmem>>, %arg3: memref<6x256xf32, #tpu.memory_space<vmem>>, %arg4: memref<4x256xf32, #tpu.memory_space<vmem>>, %arg5: memref<4x256xf32, #tpu.memory_space<vmem>>, %arg6: memref<20x256xf32, #tpu.memory_space<vmem>>, %arg7: memref<2x256xf32, #tpu.memory_space<vmem>>, %arg8: memref<2x256xi32, #tpu.memory_space<vmem>>) attributes {dimension_semantics = [], scalar_prefetch = 0 : i64, scratch_operands = 0 : i64, tpu.core_type = #tpu.core_type<tc>} {
    %c0 = arith.constant 0 : index
    %c0_0 = arith.constant 0 : index
    %0 = vector.load %arg0[%c0, %c0_0] : memref<6x256xf32, #tpu.memory_space<vmem>>, vector<6x256xf32>
    %c0_1 = arith.constant 0 : index
    %c0_2 = arith.constant 0 : index
    %1 = vector.load %arg1[%c0_1, %c0_2] : memref<4x256xf32, #tpu.memory_space<vmem>>, vector<4x256xf32>
    %c0_3 = arith.constant 0 : index
    %c0_4 = arith.constant 0 : index
    %2 = vector.load %arg2[%c0_3, %c0_4] : memref<2x256xf32, #tpu.memory_space<vmem>>, vector<2x256xf32>
    %c0_5 = arith.constant 0 : index
    %c0_6 = arith.constant 0 : index
    %3 = vector.load %arg3[%c0_5, %c0_6] : memref<6x256xf32, #tpu.memory_space<vmem>>, vector<6x256xf32>
    %c0_7 = arith.constant 0 : index
    %c0_8 = arith.constant 0 : index
    %4 = vector.load %arg4[%c0_7, %c0_8] : memref<4x256xf32, #tpu.memory_space<vmem>>, vector<4x256xf32>
    %c0_9 = arith.constant 0 : index
    %c0_10 = arith.constant 0 : index
    %5 = vector.load %arg5[%c0_9, %c0_10] : memref<4x256xf32, #tpu.memory_space<vmem>>, vector<4x256xf32>
    %6 = tpu.iota {dimensions = array<i32: 1>} : vector<1x256xi32>
    %c15_i32 = arith.constant 15 : i32
    %7 = vector.broadcast %c15_i32 : i32 to vector<1x256xi32>
    %8 = arith.andi %6, %7 : vector<1x256xi32>
    %9 = arith.sitofp %8 : vector<1x256xi32> to vector<1x256xf32>
    %c4_i32 = arith.constant 4 : i32
    %10 = vector.broadcast %c4_i32 : i32 to vector<1x256xi32>
    %11 = arith.shrsi %6, %10 : vector<1x256xi32>
    %12 = arith.sitofp %11 : vector<1x256xi32> to vector<1x256xf32>
    %13 = vector.extract_strided_slice %0 {offsets = [0, 0], sizes = [1, 256], strides = [1, 1]} : vector<6x256xf32> to vector<1x256xf32>
    %c0_i32 = arith.constant 0 : i32
    %14 = vector.broadcast %c0_i32 : i32 to vector<1x256xi32>
    %15 = vector.extract_strided_slice %0 {offsets = [1, 0], sizes = [1, 256], strides = [1, 1]} : vector<6x256xf32> to vector<1x256xf32>
    %16 = arith.cmpf ogt, %15, %13 : vector<1x256xf32>
    %17 = arith.select %16, %15, %13 : vector<1x256xi1>, vector<1x256xf32>
    %c1_i32 = arith.constant 1 : i32
    %18 = vector.broadcast %c1_i32 : i32 to vector<1x256xi32>
    %19 = arith.select %16, %18, %14 : vector<1x256xi1>, vector<1x256xi32>
    %20 = vector.extract_strided_slice %0 {offsets = [2, 0], sizes = [1, 256], strides = [1, 1]} : vector<6x256xf32> to vector<1x256xf32>
    %21 = arith.cmpf ogt, %20, %17 : vector<1x256xf32>
    %22 = arith.select %21, %20, %17 : vector<1x256xi1>, vector<1x256xf32>
    %c2_i32 = arith.constant 2 : i32
    %23 = vector.broadcast %c2_i32 : i32 to vector<1x256xi32>
    %24 = arith.select %21, %23, %19 : vector<1x256xi1>, vector<1x256xi32>
    %cst = arith.constant 0.000000e+00 : f32
    %25 = vector.broadcast %cst : f32 to vector<1x256xf32>
    %26 = arith.subf %25, %22 : vector<1x256xf32>
    %27 = math.exp %26 : vector<1x256xf32>
    %cst_11 = arith.constant 1.000000e+00 : f32
    %28 = vector.broadcast %cst_11 : f32 to vector<1x256xf32>
    %29 = arith.addf %28, %27 : vector<1x256xf32>
    %30 = tpu.reciprocal %29 {approx = true} : vector<1x256xf32> -> vector<1x256xf32>
    %31 = vector.extract_strided_slice %1 {offsets = [0, 0], sizes = [1, 256], strides = [1, 1]} : vector<4x256xf32> to vector<1x256xf32>
    %32 = arith.addf %9, %31 : vector<1x256xf32>
    %cst_12 = arith.constant 8.000000e-01 : f32
    %33 = vector.broadcast %cst_12 : f32 to vector<1x256xf32>
    %34 = arith.mulf %32, %33 : vector<1x256xf32>
    %cst_13 = arith.constant -5.120000e+01 : f32
    %35 = vector.broadcast %cst_13 : f32 to vector<1x256xf32>
    %36 = arith.addf %34, %35 : vector<1x256xf32>
    %37 = vector.extract_strided_slice %1 {offsets = [1, 0], sizes = [1, 256], strides = [1, 1]} : vector<4x256xf32> to vector<1x256xf32>
    %38 = arith.addf %12, %37 : vector<1x256xf32>
    %cst_14 = arith.constant 8.000000e-01 : f32
    %39 = vector.broadcast %cst_14 : f32 to vector<1x256xf32>
    %40 = arith.mulf %38, %39 : vector<1x256xf32>
    %cst_15 = arith.constant -5.120000e+01 : f32
    %41 = vector.broadcast %cst_15 : f32 to vector<1x256xf32>
    %42 = arith.addf %40, %41 : vector<1x256xf32>
    %43 = vector.extract_strided_slice %3 {offsets = [0, 0], sizes = [3, 256], strides = [1, 1]} : vector<6x256xf32> to vector<3x256xf32>
    %44 = math.exp %43 : vector<3x256xf32>
    %45 = vector.extract_strided_slice %2 {offsets = [0, 0], sizes = [1, 256], strides = [1, 1]} : vector<2x256xf32> to vector<1x256xf32>
    %46 = vector.extract_strided_slice %44 {offsets = [2, 0], sizes = [1, 256], strides = [1, 1]} : vector<3x256xf32> to vector<1x256xf32>
    %cst_16 = arith.constant 5.000000e-01 : f32
    %47 = vector.broadcast %cst_16 : f32 to vector<1x256xf32>
    %48 = arith.mulf %47, %46 : vector<1x256xf32>
    %49 = arith.subf %45, %48 : vector<1x256xf32>
    %50 = vector.extract_strided_slice %4 {offsets = [0, 0], sizes = [2, 256], strides = [1, 1]} : vector<4x256xf32> to vector<2x256xf32>
    %51 = vector.extract_strided_slice %5 {offsets = [0, 0], sizes = [2, 256], strides = [1, 1]} : vector<4x256xf32> to vector<2x256xf32>
    %52 = tpu.concatenate %36, %42, %49, %44, %50, %51 in 0 : vector<1x256xf32>, vector<1x256xf32>, vector<1x256xf32>, vector<3x256xf32>, vector<2x256xf32>, vector<2x256xf32> -> vector<10x256xf32>
    %53 = vector.extract_strided_slice %0 {offsets = [3, 0], sizes = [1, 256], strides = [1, 1]} : vector<6x256xf32> to vector<1x256xf32>
    %c0_i32_17 = arith.constant 0 : i32
    %54 = vector.broadcast %c0_i32_17 : i32 to vector<1x256xi32>
    %55 = vector.extract_strided_slice %0 {offsets = [4, 0], sizes = [1, 256], strides = [1, 1]} : vector<6x256xf32> to vector<1x256xf32>
    %56 = arith.cmpf ogt, %55, %53 : vector<1x256xf32>
    %57 = arith.select %56, %55, %53 : vector<1x256xi1>, vector<1x256xf32>
    %c1_i32_18 = arith.constant 1 : i32
    %58 = vector.broadcast %c1_i32_18 : i32 to vector<1x256xi32>
    %59 = arith.select %56, %58, %54 : vector<1x256xi1>, vector<1x256xi32>
    %60 = vector.extract_strided_slice %0 {offsets = [5, 0], sizes = [1, 256], strides = [1, 1]} : vector<6x256xf32> to vector<1x256xf32>
    %61 = arith.cmpf ogt, %60, %57 : vector<1x256xf32>
    %62 = arith.select %61, %60, %57 : vector<1x256xi1>, vector<1x256xf32>
    %c2_i32_19 = arith.constant 2 : i32
    %63 = vector.broadcast %c2_i32_19 : i32 to vector<1x256xi32>
    %64 = arith.select %61, %63, %59 : vector<1x256xi1>, vector<1x256xi32>
    %cst_20 = arith.constant 0.000000e+00 : f32
    %65 = vector.broadcast %cst_20 : f32 to vector<1x256xf32>
    %66 = arith.subf %65, %62 : vector<1x256xf32>
    %67 = math.exp %66 : vector<1x256xf32>
    %cst_21 = arith.constant 1.000000e+00 : f32
    %68 = vector.broadcast %cst_21 : f32 to vector<1x256xf32>
    %69 = arith.addf %68, %67 : vector<1x256xf32>
    %70 = tpu.reciprocal %69 {approx = true} : vector<1x256xf32> -> vector<1x256xf32>
    %71 = vector.extract_strided_slice %1 {offsets = [2, 0], sizes = [1, 256], strides = [1, 1]} : vector<4x256xf32> to vector<1x256xf32>
    %72 = arith.addf %9, %71 : vector<1x256xf32>
    %cst_22 = arith.constant 8.000000e-01 : f32
    %73 = vector.broadcast %cst_22 : f32 to vector<1x256xf32>
    %74 = arith.mulf %72, %73 : vector<1x256xf32>
    %cst_23 = arith.constant -5.120000e+01 : f32
    %75 = vector.broadcast %cst_23 : f32 to vector<1x256xf32>
    %76 = arith.addf %74, %75 : vector<1x256xf32>
    %77 = vector.extract_strided_slice %1 {offsets = [3, 0], sizes = [1, 256], strides = [1, 1]} : vector<4x256xf32> to vector<1x256xf32>
    %78 = arith.addf %12, %77 : vector<1x256xf32>
    %cst_24 = arith.constant 8.000000e-01 : f32
    %79 = vector.broadcast %cst_24 : f32 to vector<1x256xf32>
    %80 = arith.mulf %78, %79 : vector<1x256xf32>
    %cst_25 = arith.constant -5.120000e+01 : f32
    %81 = vector.broadcast %cst_25 : f32 to vector<1x256xf32>
    %82 = arith.addf %80, %81 : vector<1x256xf32>
    %83 = vector.extract_strided_slice %3 {offsets = [3, 0], sizes = [3, 256], strides = [1, 1]} : vector<6x256xf32> to vector<3x256xf32>
    %84 = math.exp %83 : vector<3x256xf32>
    %85 = vector.extract_strided_slice %2 {offsets = [1, 0], sizes = [1, 256], strides = [1, 1]} : vector<2x256xf32> to vector<1x256xf32>
    %86 = vector.extract_strided_slice %84 {offsets = [2, 0], sizes = [1, 256], strides = [1, 1]} : vector<3x256xf32> to vector<1x256xf32>
    %cst_26 = arith.constant 5.000000e-01 : f32
    %87 = vector.broadcast %cst_26 : f32 to vector<1x256xf32>
    %88 = arith.mulf %87, %86 : vector<1x256xf32>
    %89 = arith.subf %85, %88 : vector<1x256xf32>
    %90 = vector.extract_strided_slice %4 {offsets = [2, 0], sizes = [2, 256], strides = [1, 1]} : vector<4x256xf32> to vector<2x256xf32>
    %91 = vector.extract_strided_slice %5 {offsets = [2, 0], sizes = [2, 256], strides = [1, 1]} : vector<4x256xf32> to vector<2x256xf32>
    %92 = tpu.concatenate %76, %82, %89, %84, %90, %91 in 0 : vector<1x256xf32>, vector<1x256xf32>, vector<1x256xf32>, vector<3x256xf32>, vector<2x256xf32>, vector<2x256xf32> -> vector<10x256xf32>
    %93 = tpu.concatenate %52, %92 in 0 : vector<10x256xf32>, vector<10x256xf32> -> vector<20x256xf32>
    %c0_27 = arith.constant 0 : index
    %c0_28 = arith.constant 0 : index
    %94 = vector.load %arg6[%c0_27, %c0_28] : memref<20x256xf32, #tpu.memory_space<vmem>>, vector<20x256xf32>
    tpu.vector_store %arg6[%c0_27, %c0_28], %93 {strides = array<i32>} : memref<20x256xf32, #tpu.memory_space<vmem>>, vector<20x256xf32>,
    %95 = tpu.concatenate %30, %70 in 0 : vector<1x256xf32>, vector<1x256xf32> -> vector<2x256xf32>
    %c0_29 = arith.constant 0 : index
    %c0_30 = arith.constant 0 : index
    %96 = vector.load %arg7[%c0_29, %c0_30] : memref<2x256xf32, #tpu.memory_space<vmem>>, vector<2x256xf32>
    tpu.vector_store %arg7[%c0_29, %c0_30], %95 {strides = array<i32>} : memref<2x256xf32, #tpu.memory_space<vmem>>, vector<2x256xf32>,
    %97 = tpu.concatenate %24, %64 in 0 : vector<1x256xi32>, vector<1x256xi32> -> vector<2x256xi32>
    %c0_31 = arith.constant 0 : index
    %c0_32 = arith.constant 0 : index
    %98 = vector.load %arg8[%c0_31, %c0_32] : memref<2x256xi32, #tpu.memory_space<vmem>>, vector<2x256xi32>
    tpu.vector_store %arg8[%c0_31, %c0_32], %97 {strides = array<i32>} : memref<2x256xi32, #tpu.memory_space<vmem>>, vector<2x256xi32>,
    return
  }
}

</mosaic_0001>

<bundles_post_ra>
// kernel: tpu_custom_call.1
= control target key start
LH: loop header
LB: loop body
LE: loop exit
PB: predicated region body
PF: predicated region fallthrough
CT: control target
= control target key end

     0   :  { %14 = vsyncpa [#allocation3], 0  ;;  %s799_s0 = inlined_call_operand.hbm [shape: f32[6,256], index: 0, kind: input, shape index: {}]   ;;  %s800_s1 = inlined_call_operand.hbm [shape: f32[4,256], index: 1, kind: input, shape index: {}]   ;;  %s801_s2 = inlined_call_operand.hbm [shape: f32[2,256], index: 2, kind: input, shape index: {}]   ;;  %s802_s3 = inlined_call_operand.hbm [shape: f32[6,256], index: 3, kind: input, shape index: {}]   ;;  %s803_s4 = inlined_call_operand.hbm [shape: f32[4,256], index: 4, kind: input, shape index: {}]   ;;  %s804_s5 = inlined_call_operand.vmem [shape: f32[4,256], index: 5, kind: input, shape index: {}]   ;;  %s805_s6 = inlined_call_operand.hbm [shape: f32[20,256], index: 6, kind: output, shape index: {0}]   ;;  %s806_s7 = inlined_call_operand.hbm [shape: f32[2,256], index: 7, kind: output, shape index: {1}]   ;;  %s807_s8 = inlined_call_operand.hbm [shape: s32[2,256], index: 8, kind: output, shape index: {2}]  }
   0x1   :  { %15 = vsyncpa [#allocation6], 0 }
   0x2   :  { %16 = vsyncpa [#allocation9], 0 }
   0x3   :  { %17 = vsyncpa [#allocation4], 0 }
   0x4   :  { %18 = vsyncpa [#allocation13], 0  ;;  %s614_s27 = smov [#allocation5]   ;;  %s615_s29 = smov [#allocation8]  }
   0x5   :  { %s35_s28 = sshll.u32 %s614_s27, 4  ;;  %s55_s30 = sshll.u32 %s615_s29, 4  ;;  %s36_s28 = int_to_ptr.vmem [resolvable:$true] %s35_s28  ;;  %s56_s30 = int_to_ptr.vmem [resolvable:$true] %s55_s30 }
   0x6   :  { %s452_s9 = scalar_lea.vmem %s36_s28, 128  ;;  %p457_p1 = scmp.lt.s32.totalorder %s36_s28, %s36_s28 }
   0x7   :  { %p453_p0 = scmp.ne.s32.totalorder %s36_s28, %s452_s9  ;;  %p458_p2 = scmp.lt.s32.totalorder %s452_s9, %s452_s9 }
   0x9   :  { %p459_p3 = por %p458_p2, %p457_p1 }
   0xb   :  { %p460_p4 = pnand %p459_p3, %p453_p0 }
   0xd   :  { %463 = shalt.err (!%p460_p4)
}
   0xe   :  { %38 = dma.hbm_to_vmem [thread:$0]  %s800_s1, 128, %s36_s28, [#allocation6]  }
   0xf   :  { %s472_s12 = scalar_lea.vmem %s56_s30, 256  ;;  %p477_p6 = scmp.lt.s32.totalorder %s56_s30, %s56_s30 }
  0x10   :  { %p473_p5 = scmp.ne.s32.totalorder %s56_s30, %s472_s12  ;;  %p478_p7 = scmp.lt.s32.totalorder %s472_s12, %s472_s12 }
  0x12   :  { %p479_p8 = por %p478_p7, %p477_p6 }
  0x14   :  { %p480_p9 = pnand %p479_p8, %p473_p5 }
  0x16   :  { %483 = shalt.err (!%p480_p9)
}
  0x17   :  { %58 = dma.hbm_to_vmem [thread:$0]  %s802_s3, 256, %s56_s30, [#allocation9]  }
  0x18   :  { %s616_s15 = smov [#allocation2]   ;;  %s617_s17 = smov [#allocation7]  }
  0x19   :  { %s25_s16 = sshll.u32 %s616_s15, 4  ;;  %s45_s18 = sshll.u32 %s617_s17, 4  ;;  %s26_s16 = int_to_ptr.vmem [resolvable:$true] %s25_s16  ;;  %s46_s18 = int_to_ptr.vmem [resolvable:$true] %s45_s18 }
  0x1a   :  { %s492_s19 = scalar_lea.vmem %s26_s16, 256  ;;  %p497_p11 = scmp.lt.s32.totalorder %s26_s16, %s26_s16 }
  0x1b   :  { %p493_p10 = scmp.ne.s32.totalorder %s26_s16, %s492_s19  ;;  %p498_p12 = scmp.lt.s32.totalorder %s492_s19, %s492_s19 }
  0x1d   :  { %p499_p13 = por %p498_p12, %p497_p11 }
  0x1f   :  { %p500_p0 = pnand %p499_p13, %p493_p10 }
  0x21   :  { %503 = shalt.err (!%p500_p0)
}
  0x22   :  { %28 = dma.hbm_to_vmem [thread:$0]  %s799_s0, 256, %s26_s16, [#allocation3]  }
  0x23   :  { %s512_s21 = scalar_lea.vmem %s46_s18, 64  ;;  %p517_p2 = scmp.lt.s32.totalorder %s46_s18, %s46_s18 }
  0x24   :  { %p513_p1 = scmp.ne.s32.totalorder %s46_s18, %s512_s21  ;;  %p518_p3 = scmp.lt.s32.totalorder %s512_s21, %s512_s21 }
  0x26   :  { %p519_p4 = por %p518_p3, %p517_p2 }
  0x28   :  { %p520_p5 = pnand %p519_p4, %p513_p1 }
  0x2a   :  { %523 = shalt.err (!%p520_p5)
}
  0x2b   :  { %48 = dma.hbm_to_vmem [thread:$0]  %s801_s2, 64, %s46_s18, [#allocation6]  }
  0x2c   :  { %s618_s23 = smov [#allocation10]  }
  0x2d   :  { %s65_s24 = sshll.u32 %s618_s23, 4  ;;  %s66_s24 = int_to_ptr.vmem [resolvable:$true] %s65_s24 }
  0x2e   :  { %s532_s25 = scalar_lea.vmem %s66_s24, 128  ;;  %p537_p7 = scmp.lt.s32.totalorder %s66_s24, %s66_s24 }
  0x2f   :  { %p533_p6 = scmp.ne.s32.totalorder %s66_s24, %s532_s25  ;;  %p538_p8 = scmp.lt.s32.totalorder %s532_s25, %s532_s25 }
  0x31   :  { %p539_p9 = por %p538_p8, %p537_p7 }
  0x33   :  { %p540_p10 = pnand %p539_p9, %p533_p6 }
  0x35   :  { %543 = shalt.err (!%p540_p10)
}
  0x36   :  { %68 = dma.hbm_to_vmem [thread:$0]  %s803_s4, 128, %s66_s24, [#allocation9]  }
  0x37   :  { %604 = dma.done.wait [#allocation3], 256  }
  0x38   :  { %605 = vsyncadd [#allocation3], 4294967040 }
  0x39   :  { %606 = dma.done.wait [#allocation6], 192  }
  0x3a   :  { %607 = vsyncadd [#allocation6], 4294967104 }
  0x3b   :  { %608 = dma.done.wait [#allocation9], 384  }
  0x3c   :  { %609 = vsyncadd [#allocation9], 4294966912  ;;  %v94_v0 = vlaneseq  ;;  %v86_v6 = vld [vmem:[#allocation2] sm:$0x3f]  ;;  %v87_v7 = vld [vmem:[#allocation2 + $0x8] sm:$0x3f] }
  0x3d   :  { %v88_v8 = vld [vmem:[#allocation5] sm:$0xff]  ;;  %v107_v10 = vrot.slane %v86_v6, 7  ;;  %v108_v11 = vrot.slane %v87_v7, 7  ;;  %v90_v12 = vld [vmem:[#allocation8] sm:$0x3f]  ;;  %vm225_vm4 = vcmask 1040384  }
  0x3e   :  { %v686_v1 = vshrl.u32 %v94_v0, 7  ;;  %v95_v2 = vand.u32 127, %v94_v0  ;;  %v91_v15 = vld [vmem:[#allocation8 + $0x8] sm:$0x3f]  ;;  %v174_v17 = vmul.f32 1.442695, %v90_v12 }
  0x3f   :  { %vm694_vm0 = vcmp.gt.f32.partialorder %v86_v6, %v107_v10  ;;  %vm698_vm1 = vcmp.gt.f32.partialorder %v87_v7, %v108_v11  ;;  %v176_v26 = vmul.f32 1.442695, %v91_v15  ;;  %v619_v36 = vmov 1983009808   ;;  %v89_v34 = vld [vmem:[#allocation7] sm:$0xf] }
  0x40   :  { %v160_v3 = vsub.s32 1, %v686_v1  ;;  %v101_v4 = vshra.s32 %v95_v2, 4  ;;  %v144_v5 = vsub.s32 0, %v686_v1  ;;  %v97_v9 = vand.u32 15, %v95_v2 }
  0x41   :  { %v255_v14 = vsub.s32 3, %v686_v1  ;;  %v96_v18 = vadd.s32 128, %v95_v2  ;;  %v148_v19 = vsub.s32 4, %v686_v1  ;;  %v164_v23 = vsub.s32 5, %v686_v1 }
  0x42   :  { %v161_v13 = vrot.slane %v88_v8, %v160_v3  ;;  %v103_v16 = vcvt.s32.f32 %v101_v4  ;;  %v145_v22 = vrot.slane %v88_v8, %v144_v5  ;;  %v113_v24 = vsel %vm694_vm0, %v86_v6, %v107_v10 }
  0x43   :  { %v114_v25 = vsel %vm698_vm1, %v87_v7, %v108_v11  ;;  %432 = vpow2.f32 %v174_v17  ;;  %v119_v27 = vrot.slane %v113_v24, 7  ;;  %v256_v30 = vrot.slane %v88_v8, %v255_v14  ;;  %v735_v11 = vld [vmem:[#allocation10] sm:$0xff] }
  0x44   :  { %v120_v28 = vrot.slane %v114_v25, 7  ;;  %v168_v29 = vadd.f32 %v161_v13, %v103_v16  ;;  %v99_v31 = vcvt.s32.f32 %v97_v9  ;;  %434 = vpow2.f32 %v176_v26 }
  0x45   :  { %v102_v32 = vshra.s32 %v96_v18, 4  ;;  %v206_v33 = vsub.s32 2, %v686_v1  ;;  %vm712_vm2 = vcmp.gt.f32.partialorder %v86_v6, %v119_v27  ;;  %v184_v37 = vunpack.c.l.s4 %v619_v36 }
  0x46   :  { %vm716_vm3 = vcmp.gt.f32.partialorder %v87_v7, %v120_v28  ;;  %v98_v38 = vand.u32 15, %v96_v18  ;;  %v125_v39 = vsel %vm712_vm2, %v86_v6, %v119_v27  ;;  %v152_v41 = vadd.f32 %v145_v22, %v99_v31 }
  0x47   :  { %v126_v40 = vsel %vm716_vm3, %v87_v7, %v120_v28  ;;  %v165_v42 = vrot.slane %v88_v8, %v164_v23  ;;  %v131_v43 = vsub.f32 0.0, %v125_v39  ;;  %v170_v45 = vmul.f32 0.8, %v168_v29 }
  0x48   :  { %v132_v44 = vsub.f32 0.0, %v126_v40  ;;  %v263_v46 = vadd.f32 %v256_v30, %v103_v16  ;;  %v104_v47 = vcvt.s32.f32 %v102_v32  ;;  %v149_v48 = vrot.slane %v88_v8, %v148_v19 }
  0x49   :  { %v240_v49 = vrot.slane %v88_v8, %v206_v33  ;;  %v243_v50 = vsub.s32 6, %v686_v1  ;;  %v133_v51 = vmul.f32 1.442695, %v131_v43  ;;  %v100_v53 = vcvt.s32.f32 %v98_v38 }
  0x4a   :  { %v135_v52 = vmul.f32 1.442695, %v132_v44  ;;  %v185_v54 = vunpack.c.0.s8 %v184_v37  ;;  %v169_v55 = vadd.f32 %v165_v42, %v104_v47  ;;  %v154_v57 = vmul.f32 0.8, %v152_v41 }
  0x4b   :  { %v244_v56 = vrot.slane %v88_v8, %v243_v50  ;;  %436 = vpow2.f32 %v133_v51  ;;  %v247_v58 = vadd.f32 %v240_v49, %v99_v31  ;;  %v259_v59 = vsub.s32 7, %v686_v1 }
  0x4c   :  { %438 = vpow2.f32 %v135_v52  ;;  %v172_v60 = vadd.f32 -51.2, %v170_v45  ;;  %v153_v61 = vadd.f32 %v149_v48, %v100_v53  ;;  %v265_v62 = vmul.f32 0.8, %v263_v46 }
  0x4d   :  { %v248_v63 = vadd.f32 %v244_v56, %v100_v53  ;;  %v260_v0 = vrot.slane %v88_v8, %v259_v59  ;;  %v188_v2 = vsub.s32 %v185_v54, %v686_v1  ;;  %v171_v4 = vmul.f32 0.8, %v169_v55 }
  0x4e   :  { %v620_v6 = vmov 0   ;;  %v156_v12 = vadd.f32 -51.2, %v154_v57  ;;  %v249_v13 = vmul.f32 0.8, %v247_v58  ;;  %v195_v17 = vrot.slane %v172_v60, 7 }
  0x4f   :  { %v115_v7 = vsel %vm694_vm0, 1, %v620_v6  ;;  %v116_v9 = vsel %vm698_vm1, 1, %v620_v6  ;;  %v264_v15 = vadd.f32 %v260_v0, %v104_v47  ;;  %v155_v18 = vmul.f32 0.8, %v153_v61 }
  0x50   :  { %v733_v10 = vpop.eup %432  ;;  %v127_v16 = vrot.slane %v115_v7, 7  ;;  %v267_v19 = vadd.f32 -51.2, %v265_v62  ;;  %vm228_vm5 = vcmask 1041408   ;;  %v250_v20 = vmul.f32 0.8, %v248_v63 }
  0x51   :  { %v178_v8 = vmul.f32 0.5, %v733_v10  ;;  %v738_v22 = vpop.eup %434  ;;  %v266_v23 = vmul.f32 0.8, %v264_v15  ;;  %v128_v21 = vrot.slane %v116_v9, 7  ;;  %vm231_vm6 = vcmask 1042432   ;;  %v93_v62 = vld [vmem:[%s804_s5] sm:$0xff] }
  0x52   :  { %v129_v24 = vsel %vm712_vm2, 2, %v127_v16  ;;  %v179_v25 = vmul.f32 0.5, %v738_v22  ;;  %v173_v26 = vadd.f32 -51.2, %v171_v4  ;;  %v217_v29 = vcombine.high %v735_v11, %v735_v11  ;;  %s621_s5 = smov [#allocation11]  }
  0x53   :  { %v352_v27 = vrot.slane %v129_v24, 2  ;;  %v354_v28 = vrot.slane %v129_v24, 4  ;;  %v251_v30 = vadd.f32 -51.2, %v249_v13  ;;  %v268_v31 = vadd.f32 -51.2, %v266_v23 }
  0x54   :  { %v130_v32 = vsel %vm716_vm3, 2, %v128_v21  ;;  %v182_v36 = vcombine.low %v178_v8, %v179_v25  ;;  %v269_v37 = vcombine.high %v178_v8, %v179_v25  ;;  %v281_v40 = vrot.slane %v267_v19, 7  ;;  %s372_s27 = sshll.u32 %s621_s5, 4  ;;  %s373_s27 = int_to_ptr.vmem [resolvable:$true] %s372_s27 }
  0x55   :  { %v353_v38 = vrot.slane %v130_v32, 2  ;;  %v355_v39 = vrot.slane %v130_v32, 4  ;;  %v252_v41 = vadd.f32 -51.2, %v250_v20  ;;  %v282_v42 = vrot.slane %v268_v31, 7  ;;  %s544_s28 = scalar_lea.vmem %s373_s27, 768  ;;  %p549_p12 = scmp.lt.s32.totalorder %s373_s27, %s373_s27 }
  0x56   :  { %v356_v43 = vsel %vm225_vm4, %v352_v27, %v354_v28  ;;  %v189_v44 = vrot.slane %v182_v36, %v188_v2  ;;  %vm234_vm7 = vcmask 1045504   ;;  %v276_v45 = vrot.slane %v269_v37, %v188_v2  ;;  %p545_p11 = scmp.ne.s32.totalorder %s373_s27, %s544_s28  ;;  %p550_p13 = scmp.lt.s32.totalorder %s544_s28, %s544_s28 }
  0x57   :  { %v357_v46 = vsel %vm225_vm4, %v353_v38, %v355_v39  ;;  %v218_v47 = vrot.slane %v735_v11, 2  ;;  %v157_v48 = vadd.f32 -51.2, %v155_v18  ;;  %v196_v35 = vrot.slane %v173_v26, 7 }
  0x58   :  { %v358_v49 = vcombine.low %v356_v43, %v357_v46  ;;  %v437_v50 = vpop.eup %436  ;;  %v190_v51 = vcombine.high %v189_v44, %v189_v44  ;;  %v226_v52 = vsel %vm225_vm4, %v156_v12, %v195_v17  ;;  %v278_v53 = vsub.f32 %v89_v34, %v276_v45  ;;  %p551_p0 = por %p550_p13, %p549_p12 }
  0x59   :  { %v219_v54 = vrot.slane %v217_v29, 2  ;;  %v439_v55 = vpop.eup %438  ;;  %v137_v56 = vadd.f32 1.0, %v437_v50  ;;  %v296_v57 = vcombine.low %v735_v11, %v735_v11  ;;  %v300_v58 = vsel %vm225_vm4, %v251_v30, %v281_v40 }
  0x5a   :  { %v301_v59 = vsel %vm225_vm4, %v252_v41, %v282_v42  ;;  %416 = vst.sshfl [vmem:[#allocation14] sm:$0x33 pattern:$0x76325410] %v358_v49  ;;  %v138_v60 = vadd.f32 1.0, %v439_v55  ;;  %v192_v61 = vsub.f32 %v89_v34, %v190_v51  ;;  %v289_v63 = vrot.slane %v278_v53, %v160_v3  ;;  %p552_p1 = pnand %p551_p0, %p545_p11 }
  0x5b   :  { %v293_v0 = vrot.slane %v278_v53, %v255_v14  ;;  %440 = vrcp.f32 %v137_v56  ;;  %v212_v2 = vrot.slane %v733_v10, 5  ;;  %v213_v4 = vrot.slane %v738_v22, 5 }
  0x5c   :  { %v227_v6 = vsel %vm225_vm4, %v157_v48, %v196_v35  ;;  %442 = vrcp.f32 %v138_v60  ;;  %v203_v7 = vrot.slane %v192_v61, %v144_v5  ;;  %v207_v9 = vrot.slane %v192_v61, %v206_v33 }
  0x5d   :  { %v302_v12 = vsel %vm228_vm5, %v300_v58, %v289_v63  ;;  %v223_v14 = vcombine.high %v93_v62, %v93_v62  ;;  %v303_v13 = vsel %vm228_vm5, %v301_v59, %v293_v0 }
  0x5e   :  { %v304_v3 = vsel %vm231_vm6, %v302_v12, %v733_v10  ;;  %v229_v15 = vsel %vm228_vm5, %v226_v52, %v203_v7  ;;  %v230_v16 = vsel %vm228_vm5, %v227_v6, %v207_v9  ;;  %v305_v1 = vsel %vm231_vm6, %v303_v13, %v738_v22 }
  0x5f   :  { %v306_v8 = vsel %vm234_vm7, %v304_v3, %v296_v57  ;;  %v232_v5 = vsel %vm231_vm6, %v229_v15, %v212_v2  ;;  %v233_v33 = vsel %vm231_vm6, %v230_v16, %v213_v4  ;;  %v307_v10 = vsel %vm234_vm7, %v305_v1, %v735_v11 }
  0x60   :  { %v310_v17 = vrot.slane %v306_v8, 6  ;;  %v235_v18 = vsel %vm234_vm7, %v232_v5, %v218_v47  ;;  %v236_v19 = vsel %vm234_vm7, %v233_v33, %v219_v54  ;;  %v311_v20 = vrot.slane %v307_v10, 6 }
  0x61   :  { %322 = vst [vmem:[#allocation11] sm:$0xff] %v235_v18  ;;  %323 = vst [vmem:[#allocation11 + $0x8] sm:$0xff] %v236_v19 }
  0x62   :  { %v320_v23 = vsel %vm228_vm5, %v93_v62, %v310_v17  ;;  %v313_v22 = vsel %vm228_vm5, %v310_v17, %v93_v62  ;;  %v321_v21 = vsel %vm228_vm5, %v223_v14, %v311_v20  ;;  %v315_v24 = vsel %vm228_vm5, %v311_v20, %v223_v14 }
  0x63   :  { %324 = vst [vmem:[#allocation11 + $0x10] sm:$0xff] %v320_v23  ;;  %326 = vst [vmem:[#allocation11 + $0x20] sm:$0xf] %v313_v22 }
  0x64   :  { %325 = vst [vmem:[#allocation11 + $0x18] sm:$0xff] %v321_v21  ;;  %327 = vst [vmem:[#allocation11 + $0x28] sm:$0xf] %v315_v24 }
  0x65   :  { %555 = shalt.err (!%p552_p1)
}
  0x66   :  { %s622_s29 = smov 256   ;;  %s623_s30 = smov 16  }
  0x67   :  { %378 = dma.vmem_to_hbm [thread:$0]  %s373_s27, 768, %s805_s6, [#allocation4], %s622_s29, %s622_s29, %s623_s30  }
  0x68   :  { %v441_v11 = vpop.eup %440  ;;  %s624_s11 = smov [#allocation12]   ;;  %s625_s13 = smov [#allocation14]  }
  0x69   :  { %v443_v25 = vpop.eup %442  ;;  %v330_v26 = vrot.slane %v441_v11, 2  ;;  %v334_v27 = vrot.slane %v441_v11, 4  ;;  %s385_s12 = sshll.u32 %s624_s11, 4  ;;  %s395_s14 = sshll.u32 %s625_s13, 4  ;;  %s386_s12 = int_to_ptr.vmem [resolvable:$true] %s385_s12  ;;  %s396_s14 = int_to_ptr.vmem [resolvable:$true] %s395_s14 }
  0x6a   :  { %v331_v28 = vrot.slane %v443_v25, 2  ;;  %v335_v29 = vrot.slane %v443_v25, 4  ;;  %s564_s15 = scalar_lea.vmem %s386_s12, 64  ;;  %p569_p3 = scmp.lt.s32.totalorder %s386_s12, %s386_s12 }
  0x6b   :  { %v338_v30 = vsel %vm225_vm4, %v330_v26, %v334_v27  ;;  %p565_p2 = scmp.ne.s32.totalorder %s386_s12, %s564_s15  ;;  %p570_p4 = scmp.lt.s32.totalorder %s564_s15, %s564_s15 }
  0x6c   :  { %v339_v31 = vsel %vm225_vm4, %v331_v28, %v335_v29 }
  0x6d   :  { %v342_v32 = vcombine.low %v338_v30, %v339_v31  ;;  %p571_p5 = por %p570_p4, %p569_p3 }
  0x6f   :  { %415 = vst.sshfl [vmem:[#allocation12] sm:$0x33 pattern:$0x76325410] %v342_v32  ;;  %p572_p6 = pnand %p571_p5, %p565_p2 }
  0x71   :  { %575 = shalt.err (!%p572_p6)
}
  0x72   :  { %388 = dma.vmem_to_hbm [thread:$0]  %s386_s12, 64, %s806_s7, [#allocation13]  }
  0x73   :  { %s584_s17 = scalar_lea.vmem %s396_s14, 64  ;;  %p589_p8 = scmp.lt.s32.totalorder %s396_s14, %s396_s14 }
  0x74   :  { %p585_p7 = scmp.ne.s32.totalorder %s396_s14, %s584_s17  ;;  %p590_p9 = scmp.lt.s32.totalorder %s584_s17, %s584_s17 }
  0x76   :  { %p591_p10 = por %p590_p9, %p589_p8 }
  0x78   :  { %p592_p11 = pnand %p591_p10, %p585_p7 }
  0x7a   :  { %595 = shalt.err (!%p592_p11)
}
  0x7b   :  { %398 = dma.vmem_to_hbm [thread:$0]  %s396_s14, 64, %s807_s8, [#allocation13]  }
  0x7c   :  { %610 = dma.done.wait [#allocation4], 768  }
  0x7d   :  { %611 = vsyncadd [#allocation4], 4294966528 }
  0x7e   :  { %612 = dma.done.wait [#allocation13], 128  }
  0x7f   :  { %613 = vsyncadd [#allocation13], 4294967168 }
  0x80   :  { %408 = vsyncpa [#allocation3], 1 }
  0x81   :  { %409 = vsyncpa [#allocation6], 1 }
  0x82   :  { %410 = vsyncpa [#allocation9], 1 }
  0x83   :  { %411 = vsyncpa [#allocation4], 1 }
  0x84   :  { %412 = vsyncpa [#allocation13], 1 }

</bundles_post_ra>
